<compile_context>
chip_gen: v7x
topology: tpu7x:2x2x1
jax: 0.10.0
libtpu: 0.0.40
codegen_flags: <defaults>
</compile_context>

<pallas_src>
import jax
import jax.numpy as jnp
from jax.experimental import pallas as pl
from jax.experimental.pallas import tpu as pltpu  # noqa: F401  (TPU backend)

# ---- small shapes consistent with the module ----
BS = 2          # batch size
SEQ = 8         # sequence length
H = 32          # hidden_size
HALF = H // 2   # int(hidden_size / 2)
TAG = 3         # tag_size


def _seq_label_kernel(x_ref, w1_ref, b1_ref, w2_ref, b2_ref, o_ref):
    """Fused: relu(x @ w1 + b1) @ [w2_sub | w2_obj] + [b2_sub | b2_obj]."""
    hidden = jnp.dot(x_ref[...], w1_ref[...],
                     preferred_element_type=jnp.float32) + b1_ref[...]
    hidden = jnp.maximum(hidden, 0.0)
    # dropout -> identity (eval mode)
    o_ref[...] = jnp.dot(hidden, w2_ref[...],
                         preferred_element_type=jnp.float32) + b2_ref[...]


def sequence_label_for_so(x, w1, b1, w2_sub, b2_sub, w2_obj, b2_obj):
    """x: (bs, seq, h) f32 -> (sub_output, obj_output), each (bs, seq, tag)."""
    bs, seq, h = x.shape
    m = bs * seq
    half = w1.shape[1]
    tag = w2_sub.shape[1]

    # Fuse the two heads into one wider matmul (single launch, single writeback).
    w2_cat = jnp.concatenate([w2_sub, w2_obj], axis=1)            # (half, 2*tag)
    b2_cat = jnp.concatenate([b2_sub, b2_obj], axis=0)            # (2*tag,)

    out = pl.pallas_call(
        _seq_label_kernel,
        out_shape=jax.ShapeDtypeStruct((m, 2 * tag), jnp.float32),
        grid=(1,),
        in_specs=[
            pl.BlockSpec((m, h), lambda i: (0, 0)),
            pl.BlockSpec((h, half), lambda i: (0, 0)),
            pl.BlockSpec((1, half), lambda i: (0, 0)),
            pl.BlockSpec((half, 2 * tag), lambda i: (0, 0)),
            pl.BlockSpec((1, 2 * tag), lambda i: (0, 0)),
        ],
        out_specs=pl.BlockSpec((m, 2 * tag), lambda i: (0, 0)),
    )(x.reshape(m, h), w1, b1.reshape(1, half), w2_cat, b2_cat.reshape(1, 2 * tag))

    sub_output = out[:, :tag].reshape(bs, seq, tag)
    obj_output = out[:, tag:].reshape(bs, seq, tag)
    return sub_output, obj_output


def _reference(x, w1, b1, w2_sub, b2_sub, w2_obj, b2_obj):
    hidden = jnp.maximum(x @ w1 + b1, 0.0)
    return hidden @ w2_sub + b2_sub, hidden @ w2_obj + b2_obj


if __name__ == "__main__":
    key = jax.random.PRNGKey(0)
    kx, k1, k2, k3, k4, k5, k6 = jax.random.split(key, 7)

    def w(k, shape, scale=0.02):
        return jax.random.normal(k, shape, jnp.float32) * scale

    x = jax.random.normal(kx, (BS, SEQ, H), jnp.float32)
    # Linear weights stored pre-transposed: (in_features, out_features)
    w1 = w(k1, (H, HALF));       b1 = w(k2, (HALF,))
    w2_sub = w(k3, (HALF, TAG)); b2_sub = w(k4, (TAG,))
    w2_obj = w(k5, (HALF, TAG)); b2_obj = w(k6, (TAG,))

    fwd = jax.jit(sequence_label_for_so)
    sub_out, obj_out = fwd(x, w1, b1, w2_sub, b2_sub, w2_obj, b2_obj)
    jax.block_until_ready((sub_out, obj_out))

    ref_sub, ref_obj = _reference(x, w1, b1, w2_sub, b2_sub, w2_obj, b2_obj)
    assert sub_out.shape == (BS, SEQ, TAG) and obj_out.shape == (BS, SEQ, TAG)
    assert bool(jnp.all(jnp.isfinite(sub_out))) and bool(jnp.all(jnp.isfinite(obj_out)))
    assert bool(jnp.allclose(sub_out, ref_sub, atol=1e-5, rtol=1e-5))
    assert bool(jnp.allclose(obj_out, ref_obj, atol=1e-5, rtol=1e-5))
    print("KERNEL_OK")
</pallas_src>

<mosaic_0001>
module attributes {stable_mosaic.version = 11 : i64} {
  func.func @_seq_label_kernel(%arg0: i32, %arg1: memref<16x32xf32, #tpu.memory_space<vmem>>, %arg2: memref<32x16xf32, #tpu.memory_space<vmem>>, %arg3: memref<1x16xf32, #tpu.memory_space<vmem>>, %arg4: memref<16x6xf32, #tpu.memory_space<vmem>>, %arg5: memref<1x6xf32, #tpu.memory_space<vmem>>, %arg6: memref<16x6xf32, #tpu.memory_space<vmem>>) attributes {dimension_semantics = [#tpu.dimension_semantics<arbitrary>], iteration_bounds = array<i64: 1>, scalar_prefetch = 0 : i64, scratch_operands = 0 : i64, tpu.core_type = #tpu.core_type<tc>, window_params = [{pipeline_mode = #tpu.pipeline_mode<synchronous>, transform_indices = @transform_0, window_bounds = array<i64: 16, 32>}, {pipeline_mode = #tpu.pipeline_mode<synchronous>, transform_indices = @transform_1, window_bounds = array<i64: 32, 16>}, {pipeline_mode = #tpu.pipeline_mode<synchronous>, transform_indices = @transform_2, window_bounds = array<i64: 1, 16>}, {pipeline_mode = #tpu.pipeline_mode<synchronous>, transform_indices = @transform_3, window_bounds = array<i64: 16, 6>}, {pipeline_mode = #tpu.pipeline_mode<synchronous>, transform_indices = @transform_4, window_bounds = array<i64: 1, 6>}, {pipeline_mode = #tpu.pipeline_mode<synchronous>, transform_indices = @transform_5, window_bounds = array<i64: 16, 6>}]} {
    %c0 = arith.constant 0 : index
    %c0_0 = arith.constant 0 : index
    %0 = vector.load %arg1[%c0, %c0_0] : memref<16x32xf32, #tpu.memory_space<vmem>>, vector<16x32xf32>
    %c0_1 = arith.constant 0 : index
    %c0_2 = arith.constant 0 : index
    %1 = vector.load %arg2[%c0_1, %c0_2] : memref<32x16xf32, #tpu.memory_space<vmem>>, vector<32x16xf32>
    %cst = arith.constant dense<0.000000e+00> : vector<16x16xf32>
    %2 = tpu.matmul %0, %1, %cst {dimension_numbers = #tpu.dot_dimension_numbers<[1], [0], [0], [1], [0, 0, 1, 1], [], []>} : vector<16x32xf32>, vector<32x16xf32>, vector<16x16xf32> -> vector<16x16xf32>
    %c0_3 = arith.constant 0 : index
    %c0_4 = arith.constant 0 : index
    %3 = vector.load %arg3[%c0_3, %c0_4] : memref<1x16xf32, #tpu.memory_space<vmem>>, vector<1x16xf32>
    %4 = vector.broadcast %3 : vector<1x16xf32> to vector<16x16xf32>
    %5 = arith.addf %2, %4 : vector<16x16xf32>
    %cst_5 = arith.constant 0.000000e+00 : f32
    %6 = vector.broadcast %cst_5 : f32 to vector<16x16xf32>
    %7 = arith.maximumf %5, %6 : vector<16x16xf32>
    %c0_6 = arith.constant 0 : index
    %c0_7 = arith.constant 0 : index
    %8 = vector.load %arg4[%c0_6, %c0_7] : memref<16x6xf32, #tpu.memory_space<vmem>>, vector<16x6xf32>
    %cst_8 = arith.constant dense<0.000000e+00> : vector<16x6xf32>
    %9 = tpu.matmul %7, %8, %cst_8 {dimension_numbers = #tpu.dot_dimension_numbers<[1], [0], [0], [1], [0, 0, 1, 1], [], []>} : vector<16x16xf32>, vector<16x6xf32>, vector<16x6xf32> -> vector<16x6xf32>
    %c0_9 = arith.constant 0 : index
    %c0_10 = arith.constant 0 : index
    %10 = vector.load %arg5[%c0_9, %c0_10] : memref<1x6xf32, #tpu.memory_space<vmem>>, vector<1x6xf32>
    %11 = vector.broadcast %10 : vector<1x6xf32> to vector<16x6xf32>
    %12 = arith.addf %9, %11 : vector<16x6xf32>
    %c0_11 = arith.constant 0 : index
    %c0_12 = arith.constant 0 : index
    %13 = vector.load %arg6[%c0_11, %c0_12] : memref<16x6xf32, #tpu.memory_space<vmem>>, vector<16x6xf32>
    tpu.vector_store %arg6[%c0_11, %c0_12], %12 {strides = array<i32>} : memref<16x6xf32, #tpu.memory_space<vmem>>, vector<16x6xf32>,
    return
  }
  func.func @transform_0(%arg0: i32) -> (i32, i32) {
    %c0_i32 = arith.constant 0 : i32
    %c0_i32_0 = arith.constant 0 : i32
    %c0_i32_1 = arith.constant 0 : i32
    return %c0_i32, %c0_i32_0 : i32, i32
  }
  func.func @transform_1(%arg0: i32) -> (i32, i32) {
    %c0_i32 = arith.constant 0 : i32
    %c0_i32_0 = arith.constant 0 : i32
    %c0_i32_1 = arith.constant 0 : i32
    return %c0_i32, %c0_i32_0 : i32, i32
  }
  func.func @transform_2(%arg0: i32) -> (i32, i32) {
    %c0_i32 = arith.constant 0 : i32
    %c0_i32_0 = arith.constant 0 : i32
    %c0_i32_1 = arith.constant 0 : i32
    return %c0_i32, %c0_i32_0 : i32, i32
  }
  func.func @transform_3(%arg0: i32) -> (i32, i32) {
    %c0_i32 = arith.constant 0 : i32
    %c0_i32_0 = arith.constant 0 : i32
    %c0_i32_1 = arith.constant 0 : i32
    return %c0_i32, %c0_i32_0 : i32, i32
  }
  func.func @transform_4(%arg0: i32) -> (i32, i32) {
    %c0_i32 = arith.constant 0 : i32
    %c0_i32_0 = arith.constant 0 : i32
    %c0_i32_1 = arith.constant 0 : i32
    return %c0_i32, %c0_i32_0 : i32, i32
  }
  func.func @transform_5(%arg0: i32) -> (i32, i32) {
    %c0_i32 = arith.constant 0 : i32
    %c0_i32_0 = arith.constant 0 : i32
    %c0_i32_1 = arith.constant 0 : i32
    return %c0_i32, %c0_i32_0 : i32, i32
  }
}

</mosaic_0001>

<bundles_post_ra>
// kernel: sequence_label_for_so.1
= control target key start
LH: loop header
LB: loop body
LE: loop exit
PB: predicated region body
PF: predicated region fallthrough
CT: control target
= control target key end

     0   :  { %vm33_vm0 = vcmask 261120   ;;  %vm126_vm1 = vcmask 130048   ;;  %vm208_vm2 = vcmask 48128   ;;  %s327_s1 = inlined_call_operand.vmem [shape: f32[32,16], index: 1, kind: input, shape index: {}]   ;;  %s328_s0 = inlined_call_operand.vmem [shape: f32[16,32], index: 0, kind: input, shape index: {}]   ;;  %s329_s3 = inlined_call_operand.vmem [shape: f32[16,6], index: 3, kind: input, shape index: {}]   ;;  %s330_s2 = inlined_call_operand.vmem [shape: f32[1,16], index: 2, kind: input, shape index: {}]   ;;  %s331_s4 = inlined_call_operand.vmem [shape: f32[1,6], index: 4, kind: input, shape index: {}]   ;;  %s332_s5 = inlined_call_operand.vmem [shape: f32[16,6], index: 5, kind: output, shape index: {}]  }
   0x1   :  { %v22_v0 = vld [vmem:[%s327_s1] sm:$0xff]  ;;  %v23_v1 = vld [vmem:[%s327_s1 + $0x8] sm:$0xff]  ;;  %v24_v2 = vld [vmem:[%s327_s1 + $0x10] sm:$0xff] }
   0x2   :  { %v249_v3 = vpack.c.bf16 %v23_v1, %v22_v0  ;;  %v25_v4 = vld [vmem:[%s327_s1 + $0x18] sm:$0xff]  ;;  %v20_v5 = vld [vmem:[%s328_s0] sm:$0xff]  ;;  %v21_v7 = vld [vmem:[%s328_s0 + $0x8] sm:$0xff] }
   0x3   :  { %v253_v6 = vpack.c.bf16 %v25_v4, %v24_v2  ;;  %239 = vmatprep.mubr.msk.f32.mxu0 %vm33_vm0, %v20_v5  ;;  %v117_v8 = vld [vmem:[%s329_s3] sm:$0xff]  ;;  %v118_v9 = vld [vmem:[%s329_s3 + $0x8] sm:$0xff] }
   0x4   :  { %250 = vmatprep.subr.bf16.mxu0 %v249_v3  ;;  %v257_v10 = vpack.c.bf16 %v118_v9, %v117_v8  ;;  %v215_v11 = vld [vmem:[%s330_s2] ss:$0 sm:$0xff] }
   0x5   :  { %252 = vmatpush3.bf16.msra.mxu0 %v249_v3  ;;  %v218_v18 = vld [vmem:[%s331_s4] ss:$0 sm:$0xff] }
   0x6   :  { %254 = vmatprep.subr.bf16.mxu0 %v253_v6  ;;  %258 = vmatprep.subr.bf16.mxu1 %v257_v10 }
   0x7   :  { %260 = vmatpush3.bf16.msra.mxu1 %v257_v10 }
   0x9   :  { %256 = vmatpush3.bf16.msra.mxu0 %v253_v6 }
   0xc   :  { %240 = vmatmul.mubr.msk.f32.vlgmr.msra.gmra.mrb[0].mxu0 %vm33_vm0, %v21_v7 }
  0xdf   :  { %v241_v12 = vpop.f32.mrb[0].mxu0 }
  0xe0   :  { %v112_v13 = vadd.f32 %v241_v12, %v215_v11  ;;  %v106_v14 = vpop.f32.mrb[1].mxu0 }
  0xe1   :  { %v107_v15 = vadd.f32 %v215_v11, %v106_v14 }
  0xe2   :  { %v116_v17 = vmax.f32 %v112_v13, 0.0 }
  0xe3   :  { %v115_v16 = vmax.f32 %v107_v15, 0.0 }
  0xe5   :  { %246 = vmatprep.mubr.msk.f32.mxu1 %vm126_vm1, %v115_v16 }
  0xe6   :  { %247 = vmatmul.mubr.msk.f32.vlgmr.msra.gmra.mrb[0].mxu1 %vm126_vm1, %v116_v17 }
 0x1b9   :  { %v248_v19 = vpop.f32.mrb[0].mxu1 }
 0x1ba   :  { %v205_v20 = vadd.f32 %v248_v19, %v218_v18  ;;  %v199_v21 = vpop.f32.mrb[1].mxu1 }
 0x1bb   :  { %v200_v22 = vadd.f32 %v218_v18, %v199_v21 }
 0x1bc   :  { %210 = vst.msk [vmem:[%s332_s5 + $0x8] sm:$0xff] %vm208_vm2, %v205_v20 }
 0x1bd   :  { %209 = vst.msk [vmem:[%s332_s5] sm:$0xff] %vm208_vm2, %v200_v22 }

</bundles_post_ra>
